<compile_context>
chip_gen: v5e
topology: v5e:2x2
jax: 0.10.0
libtpu: 0.0.40
codegen_flags: <defaults>
</compile_context>

<pallas_src>
import math

import jax
import jax.numpy as jnp
from jax.experimental import pallas as pl
from jax.experimental.pallas import tpu as pltpu


def _make_gc_kernel(state_size, batch_block):
    S = state_size

    def gc_kernel(x_ref, fa_ref, ba_ref, w_in_ref, wu_ref, b_ref, o_ref):
        w_in = w_in_ref[...]            # (3S, C)  stacked [Wc; Wf; Wb], BN scale folded
        wu = wu_ref[...]                # (C, 3S)  update conv, BN scale folded
        b = b_ref[...]                  # (3S + C, 1) stacked [bc; bf; bb; bu]
        b_cond = b[0 * S:1 * S]
        b_fw = b[1 * S:2 * S]
        b_bw = b[2 * S:3 * S]
        b_upd = b[3 * S:]

        # Static (unrolled) loop over the batch block: straight-line code lets the
        # scheduler overlap the small matmuls of consecutive batch elements.
        for i in range(batch_block):
            x = x_ref[i]                # (C, N)
            fa = fa_ref[i]              # (N, N)
            ba = ba_ref[i]              # (N, N)

            # Single fused M=3S matmul for the three 1x1 convolutions.
            h = jnp.dot(w_in, x, preferred_element_type=jnp.float32)   # (3S, N)

            # condense branch: relu(BN(Wc @ x))
            cond = jnp.maximum(h[0 * S:1 * S] + b_cond, 0.0)
            # forward-message branch: relu(BN((Wf @ x) @ fw_A))
            fw = jnp.maximum(
                jnp.dot(h[1 * S:2 * S], fa, preferred_element_type=jnp.float32)
                + b_fw, 0.0)
            # backward-message branch: relu(BN((Wb @ x) @ bw_A))
            bw = jnp.maximum(
                jnp.dot(h[2 * S:3 * S], ba, preferred_element_type=jnp.float32)
                + b_bw, 0.0)

            # update: BN(Wu @ cat(cond, fw, bw)) -- one K=3S matmul.
            feat = jnp.concatenate([cond, fw, bw], axis=0)             # (3S, N)
            upd = jnp.dot(wu, feat, preferred_element_type=jnp.float32) + b_upd

            # dropout == identity (eval) -> residual + relu
            o_ref[i] = jnp.maximum(upd + x, 0.0).astype(o_ref.dtype)

    return gc_kernel


def _tensorcores_per_chip():
    # v7x has 2 TensorCores per chip; v5e/v6e (and older) have 1.
    try:
        kind = jax.devices()[0].device_kind.lower()
    except Exception:
        return 1
    return 2 if any(tag in kind for tag in ("v7", "7x", "tpu7", "tpu 7")) else 1


def gc_layer(states, fw_A, bw_A, w_in, wu, b_all):
    B, C, N = states.shape
    S = w_in.shape[0] // 3

    # Batch blocking: shard over TensorCores on v7x; fold the whole batch into a
    # single kernel invocation on single-TC chips (grid steps are pure overhead
    # there at this size).
    n_tc = _tensorcores_per_chip()
    if n_tc > 1 and B % n_tc == 0:
        bb = B // n_tc
    else:
        bb = B

    # VMEM guard (matters for large N or B, and for v7x's smaller 64 MiB VMEM):
    # keep the double-buffered adjacency blocks comfortably bounded.
    per_batch_bytes = (2 * N * N + 2 * C * N) * states.dtype.itemsize
    max_bb = max(1, (8 << 20) // max(per_batch_bytes, 1))
    bb = min(bb, max_bb)
    while B % bb:
        bb -= 1

    grid = (B // bb,)

    def batched(shape):
        return pl.BlockSpec((bb,) + shape, lambda g: (g, 0, 0))

    def shared(arr):
        return pl.BlockSpec(arr.shape, lambda g, _n=arr.ndim: (0,) * _n)

    return pl.pallas_call(
        _make_gc_kernel(S, bb),
        out_shape=jax.ShapeDtypeStruct((B, C, N), states.dtype),
        grid=grid,
        in_specs=[
            batched((C, N)),       # states
            batched((N, N)),       # fw_A
            batched((N, N)),       # bw_A
            shared(w_in),          # stacked input-conv weights (3S, C)
            shared(wu),            # update weight (C, 3S)
            shared(b_all),         # stacked biases (3S + C, 1)
        ],
        out_specs=batched((C, N)),
        compiler_params=pltpu.CompilerParams(
            dimension_semantics=("parallel",)),
    )(states, fw_A, bw_A, w_in, wu, b_all)


# ----------------------------------------------------------------------------
# Parameter construction (PyTorch-equivalent init, BN folded into weights/biases)
# ----------------------------------------------------------------------------
def _conv_weight(key, out_c, in_c):
    # PyTorch Conv1d default init for k=1: U(-1/sqrt(in_c), 1/sqrt(in_c)).
    bound = 1.0 / math.sqrt(in_c)
    return jax.random.uniform(key, (out_c, in_c), jnp.float32, -bound, bound)


def _bn_params(key, channels):
    k1, k2, k3, k4 = jax.random.split(key, 4)
    gamma = 1.0 + 0.1 * jax.random.normal(k1, (channels,), jnp.float32)
    beta = 0.1 * jax.random.normal(k2, (channels,), jnp.float32)
    mean = 0.05 * jax.random.normal(k3, (channels,), jnp.float32)
    var = jax.random.uniform(k4, (channels,), jnp.float32, 0.5, 1.5)
    return gamma, beta, mean, var


def _fold_bn(w, gamma, beta, mean, var, eps=1e-5):
    scale = gamma / jnp.sqrt(var + eps)
    w_eff = (w * scale[:, None]).astype(jnp.float32)
    b_eff = ((beta - scale * mean)[:, None]).astype(jnp.float32)  # (C, 1) column
    return w_eff, b_eff


def make_params(key, in_size, state_size):
    ks = jax.random.split(key, 8)
    wc, bc = _fold_bn(_conv_weight(ks[0], state_size, in_size),
                      *_bn_params(ks[4], state_size))
    wf, bf = _fold_bn(_conv_weight(ks[1], state_size, in_size),
                      *_bn_params(ks[5], state_size))
    wb, bb = _fold_bn(_conv_weight(ks[2], state_size, in_size),
                      *_bn_params(ks[6], state_size))
    wu, bu = _fold_bn(_conv_weight(ks[3], in_size, 3 * state_size),
                      *_bn_params(ks[7], in_size))

    w_in = jnp.concatenate([wc, wf, wb], axis=0)            # (3S, C)
    b_all = jnp.concatenate([bc, bf, bb, bu], axis=0)       # (3S + C, 1)
    return w_in, wu, b_all


def reference(states, fw_A, bw_A, w_in, wu, b_all, state_size):
    S = state_size
    wc, wf, wb = w_in[:S], w_in[S:2 * S], w_in[2 * S:]
    bc, bf, bb, bu = b_all[:S], b_all[S:2 * S], b_all[2 * S:3 * S], b_all[3 * S:]

    def per(x, fa, ba):
        cond = jnp.maximum(wc @ x + bc, 0.0)
        fw = jnp.maximum((wf @ x) @ fa + bf, 0.0)
        bw = jnp.maximum((wb @ x) @ ba + bb, 0.0)
        upd = wu @ jnp.concatenate([cond, fw, bw], axis=0) + bu
        return jnp.maximum(upd + x, 0.0)

    return jax.vmap(per)(states, fw_A, bw_A)


if __name__ == "__main__":
    B, in_size, state_size, N = 2, 32, 16, 128

    key = jax.random.PRNGKey(0)
    k_states, k_fa, k_ba, k_params = jax.random.split(key, 4)

    states = jax.random.normal(k_states, (B, in_size, N), jnp.float32)
    # row-stochastic-ish adjacency matrices
    fw_A = jax.nn.softmax(jax.random.normal(k_fa, (B, N, N), jnp.float32), axis=-1)
    bw_A = jax.nn.softmax(jax.random.normal(k_ba, (B, N, N), jnp.float32), axis=-1)

    w_in, wu, b_all = make_params(k_params, in_size, state_size)

    out = jax.block_until_ready(gc_layer(states, fw_A, bw_A, w_in, wu, b_all))
    ref = jax.block_until_ready(
        reference(states, fw_A, bw_A, w_in, wu, b_all, state_size))

    assert out.shape == (B, in_size, N)
    max_err = float(jnp.max(jnp.abs(out - ref)))
    assert jnp.allclose(out, ref, rtol=1e-4, atol=1e-4), max_err

    print("KERNEL_OK")
</pallas_src>

<mosaic_0001>
module attributes {stable_mosaic.version = 11 : i64} {
  func.func @gc_kernel(%arg0: i32, %arg1: memref<2x32x128xf32, #tpu.memory_space<vmem>>, %arg2: memref<2x128x128xf32, #tpu.memory_space<vmem>>, %arg3: memref<2x128x128xf32, #tpu.memory_space<vmem>>, %arg4: memref<48x32xf32, #tpu.memory_space<vmem>>, %arg5: memref<32x48xf32, #tpu.memory_space<vmem>>, %arg6: memref<80x1xf32, #tpu.memory_space<vmem>>, %arg7: memref<2x32x128xf32, #tpu.memory_space<vmem>>) attributes {dimension_semantics = [#tpu.dimension_semantics<parallel>], iteration_bounds = array<i64: 1>, scalar_prefetch = 0 : i64, scratch_operands = 0 : i64, tpu.core_type = #tpu.core_type<tc>, window_params = [{transform_indices = @transform_0, window_bounds = array<i64: 2, 32, 128>}, {transform_indices = @transform_1, window_bounds = array<i64: 2, 128, 128>}, {transform_indices = @transform_2, window_bounds = array<i64: 2, 128, 128>}, {pipeline_mode = #tpu.pipeline_mode<synchronous>, transform_indices = @transform_3, window_bounds = array<i64: 48, 32>}, {pipeline_mode = #tpu.pipeline_mode<synchronous>, transform_indices = @transform_4, window_bounds = array<i64: 32, 48>}, {pipeline_mode = #tpu.pipeline_mode<synchronous>, transform_indices = @transform_5, window_bounds = array<i64: 80, 1>}, {transform_indices = @transform_6, window_bounds = array<i64: 2, 32, 128>}]} {
    %c0 = arith.constant 0 : index
    %c0_0 = arith.constant 0 : index
    %0 = vector.load %arg4[%c0, %c0_0] : memref<48x32xf32, #tpu.memory_space<vmem>>, vector<48x32xf32>
    %c0_1 = arith.constant 0 : index
    %c0_2 = arith.constant 0 : index
    %1 = vector.load %arg5[%c0_1, %c0_2] : memref<32x48xf32, #tpu.memory_space<vmem>>, vector<32x48xf32>
    %c0_3 = arith.constant 0 : index
    %c0_4 = arith.constant 0 : index
    %2 = vector.load %arg6[%c0_3, %c0_4] : memref<80x1xf32, #tpu.memory_space<vmem>>, vector<80x1xf32>
    %3 = vector.extract_strided_slice %2 {offsets = [0, 0], sizes = [16, 1], strides = [1, 1]} : vector<80x1xf32> to vector<16x1xf32>
    %4 = vector.extract_strided_slice %2 {offsets = [16, 0], sizes = [16, 1], strides = [1, 1]} : vector<80x1xf32> to vector<16x1xf32>
    %5 = vector.extract_strided_slice %2 {offsets = [32, 0], sizes = [16, 1], strides = [1, 1]} : vector<80x1xf32> to vector<16x1xf32>
    %6 = vector.extract_strided_slice %2 {offsets = [48, 0], sizes = [32, 1], strides = [1, 1]} : vector<80x1xf32> to vector<32x1xf32>
    %c0_5 = arith.constant 0 : index
    %c0_6 = arith.constant 0 : index
    %c0_7 = arith.constant 0 : index
    %7 = vector.load %arg1[%c0_5, %c0_6, %c0_7] : memref<2x32x128xf32, #tpu.memory_space<vmem>>, vector<1x32x128xf32>
    %8 = vector.shape_cast %7 : vector<1x32x128xf32> to vector<32x128xf32>
    %c0_8 = arith.constant 0 : index
    %c0_9 = arith.constant 0 : index
    %c0_10 = arith.constant 0 : index
    %9 = vector.load %arg2[%c0_8, %c0_9, %c0_10] : memref<2x128x128xf32, #tpu.memory_space<vmem>>, vector<1x128x128xf32>
    %10 = vector.shape_cast %9 : vector<1x128x128xf32> to vector<128x128xf32>
    %c0_11 = arith.constant 0 : index
    %c0_12 = arith.constant 0 : index
    %c0_13 = arith.constant 0 : index
    %11 = vector.load %arg3[%c0_11, %c0_12, %c0_13] : memref<2x128x128xf32, #tpu.memory_space<vmem>>, vector<1x128x128xf32>
    %12 = vector.shape_cast %11 : vector<1x128x128xf32> to vector<128x128xf32>
    %cst = arith.constant dense<0.000000e+00> : vector<48x128xf32>
    %13 = tpu.matmul %0, %8, %cst {dimension_numbers = #tpu.dot_dimension_numbers<[1], [0], [0], [1], [0, 0, 1, 1], [], []>} : vector<48x32xf32>, vector<32x128xf32>, vector<48x128xf32> -> vector<48x128xf32>
    %14 = vector.extract_strided_slice %13 {offsets = [0, 0], sizes = [16, 128], strides = [1, 1]} : vector<48x128xf32> to vector<16x128xf32>
    %15 = vector.broadcast %3 : vector<16x1xf32> to vector<16x128xf32>
    %16 = arith.addf %14, %15 : vector<16x128xf32>
    %cst_14 = arith.constant 0.000000e+00 : f32
    %17 = vector.broadcast %cst_14 : f32 to vector<16x128xf32>
    %18 = arith.maximumf %16, %17 : vector<16x128xf32>
    %19 = vector.extract_strided_slice %13 {offsets = [16, 0], sizes = [16, 128], strides = [1, 1]} : vector<48x128xf32> to vector<16x128xf32>
    %cst_15 = arith.constant dense<0.000000e+00> : vector<16x128xf32>
    %20 = tpu.matmul %19, %10, %cst_15 {dimension_numbers = #tpu.dot_dimension_numbers<[1], [0], [0], [1], [0, 0, 1, 1], [], []>} : vector<16x128xf32>, vector<128x128xf32>, vector<16x128xf32> -> vector<16x128xf32>
    %21 = vector.broadcast %4 : vector<16x1xf32> to vector<16x128xf32>
    %22 = arith.addf %20, %21 : vector<16x128xf32>
    %cst_16 = arith.constant 0.000000e+00 : f32
    %23 = vector.broadcast %cst_16 : f32 to vector<16x128xf32>
    %24 = arith.maximumf %22, %23 : vector<16x128xf32>
    %25 = vector.extract_strided_slice %13 {offsets = [32, 0], sizes = [16, 128], strides = [1, 1]} : vector<48x128xf32> to vector<16x128xf32>
    %cst_17 = arith.constant dense<0.000000e+00> : vector<16x128xf32>
    %26 = tpu.matmul %25, %12, %cst_17 {dimension_numbers = #tpu.dot_dimension_numbers<[1], [0], [0], [1], [0, 0, 1, 1], [], []>} : vector<16x128xf32>, vector<128x128xf32>, vector<16x128xf32> -> vector<16x128xf32>
    %27 = vector.broadcast %5 : vector<16x1xf32> to vector<16x128xf32>
    %28 = arith.addf %26, %27 : vector<16x128xf32>
    %cst_18 = arith.constant 0.000000e+00 : f32
    %29 = vector.broadcast %cst_18 : f32 to vector<16x128xf32>
    %30 = arith.maximumf %28, %29 : vector<16x128xf32>
    %31 = tpu.concatenate %18, %24, %30 in 0 : vector<16x128xf32>, vector<16x128xf32>, vector<16x128xf32> -> vector<48x128xf32>
    %cst_19 = arith.constant dense<0.000000e+00> : vector<32x128xf32>
    %32 = tpu.matmul %1, %31, %cst_19 {dimension_numbers = #tpu.dot_dimension_numbers<[1], [0], [0], [1], [0, 0, 1, 1], [], []>} : vector<32x48xf32>, vector<48x128xf32>, vector<32x128xf32> -> vector<32x128xf32>
    %33 = vector.broadcast %6 : vector<32x1xf32> to vector<32x128xf32>
    %34 = arith.addf %32, %33 : vector<32x128xf32>
    %35 = arith.addf %34, %8 : vector<32x128xf32>
    %cst_20 = arith.constant 0.000000e+00 : f32
    %36 = vector.broadcast %cst_20 : f32 to vector<32x128xf32>
    %37 = arith.maximumf %35, %36 : vector<32x128xf32>
    %c0_21 = arith.constant 0 : index
    %c0_22 = arith.constant 0 : index
    %c0_23 = arith.constant 0 : index
    %38 = vector.load %arg7[%c0_21, %c0_22, %c0_23] : memref<2x32x128xf32, #tpu.memory_space<vmem>>, vector<1x32x128xf32>
    %39 = vector.shape_cast %38 : vector<1x32x128xf32> to vector<32x128xf32>
    %40 = vector.shape_cast %37 : vector<32x128xf32> to vector<1x32x128xf32>
    tpu.vector_store %arg7[%c0_21, %c0_22, %c0_23], %40 {strides = array<i32>} : memref<2x32x128xf32, #tpu.memory_space<vmem>>, vector<1x32x128xf32>,
    %c1 = arith.constant 1 : index
    %c0_24 = arith.constant 0 : index
    %c0_25 = arith.constant 0 : index
    %41 = vector.load %arg1[%c1, %c0_24, %c0_25] : memref<2x32x128xf32, #tpu.memory_space<vmem>>, vector<1x32x128xf32>
    %42 = vector.shape_cast %41 : vector<1x32x128xf32> to vector<32x128xf32>
    %c1_26 = arith.constant 1 : index
    %c0_27 = arith.constant 0 : index
    %c0_28 = arith.constant 0 : index
    %43 = vector.load %arg2[%c1_26, %c0_27, %c0_28] : memref<2x128x128xf32, #tpu.memory_space<vmem>>, vector<1x128x128xf32>
    %44 = vector.shape_cast %43 : vector<1x128x128xf32> to vector<128x128xf32>
    %c1_29 = arith.constant 1 : index
    %c0_30 = arith.constant 0 : index
    %c0_31 = arith.constant 0 : index
    %45 = vector.load %arg3[%c1_29, %c0_30, %c0_31] : memref<2x128x128xf32, #tpu.memory_space<vmem>>, vector<1x128x128xf32>
    %46 = vector.shape_cast %45 : vector<1x128x128xf32> to vector<128x128xf32>
    %cst_32 = arith.constant dense<0.000000e+00> : vector<48x128xf32>
    %47 = tpu.matmul %0, %42, %cst_32 {dimension_numbers = #tpu.dot_dimension_numbers<[1], [0], [0], [1], [0, 0, 1, 1], [], []>} : vector<48x32xf32>, vector<32x128xf32>, vector<48x128xf32> -> vector<48x128xf32>
    %48 = vector.extract_strided_slice %47 {offsets = [0, 0], sizes = [16, 128], strides = [1, 1]} : vector<48x128xf32> to vector<16x128xf32>
    %49 = vector.broadcast %3 : vector<16x1xf32> to vector<16x128xf32>
    %50 = arith.addf %48, %49 : vector<16x128xf32>
    %cst_33 = arith.constant 0.000000e+00 : f32
    %51 = vector.broadcast %cst_33 : f32 to vector<16x128xf32>
    %52 = arith.maximumf %50, %51 : vector<16x128xf32>
    %53 = vector.extract_strided_slice %47 {offsets = [16, 0], sizes = [16, 128], strides = [1, 1]} : vector<48x128xf32> to vector<16x128xf32>
    %cst_34 = arith.constant dense<0.000000e+00> : vector<16x128xf32>
    %54 = tpu.matmul %53, %44, %cst_34 {dimension_numbers = #tpu.dot_dimension_numbers<[1], [0], [0], [1], [0, 0, 1, 1], [], []>} : vector<16x128xf32>, vector<128x128xf32>, vector<16x128xf32> -> vector<16x128xf32>
    %55 = vector.broadcast %4 : vector<16x1xf32> to vector<16x128xf32>
    %56 = arith.addf %54, %55 : vector<16x128xf32>
    %cst_35 = arith.constant 0.000000e+00 : f32
    %57 = vector.broadcast %cst_35 : f32 to vector<16x128xf32>
    %58 = arith.maximumf %56, %57 : vector<16x128xf32>
    %59 = vector.extract_strided_slice %47 {offsets = [32, 0], sizes = [16, 128], strides = [1, 1]} : vector<48x128xf32> to vector<16x128xf32>
    %cst_36 = arith.constant dense<0.000000e+00> : vector<16x128xf32>
    %60 = tpu.matmul %59, %46, %cst_36 {dimension_numbers = #tpu.dot_dimension_numbers<[1], [0], [0], [1], [0, 0, 1, 1], [], []>} : vector<16x128xf32>, vector<128x128xf32>, vector<16x128xf32> -> vector<16x128xf32>
    %61 = vector.broadcast %5 : vector<16x1xf32> to vector<16x128xf32>
    %62 = arith.addf %60, %61 : vector<16x128xf32>
    %cst_37 = arith.constant 0.000000e+00 : f32
    %63 = vector.broadcast %cst_37 : f32 to vector<16x128xf32>
    %64 = arith.maximumf %62, %63 : vector<16x128xf32>
    %65 = tpu.concatenate %52, %58, %64 in 0 : vector<16x128xf32>, vector<16x128xf32>, vector<16x128xf32> -> vector<48x128xf32>
    %cst_38 = arith.constant dense<0.000000e+00> : vector<32x128xf32>
    %66 = tpu.matmul %1, %65, %cst_38 {dimension_numbers = #tpu.dot_dimension_numbers<[1], [0], [0], [1], [0, 0, 1, 1], [], []>} : vector<32x48xf32>, vector<48x128xf32>, vector<32x128xf32> -> vector<32x128xf32>
    %67 = vector.broadcast %6 : vector<32x1xf32> to vector<32x128xf32>
    %68 = arith.addf %66, %67 : vector<32x128xf32>
    %69 = arith.addf %68, %42 : vector<32x128xf32>
    %cst_39 = arith.constant 0.000000e+00 : f32
    %70 = vector.broadcast %cst_39 : f32 to vector<32x128xf32>
    %71 = arith.maximumf %69, %70 : vector<32x128xf32>
    %c1_40 = arith.constant 1 : index
    %c0_41 = arith.constant 0 : index
    %c0_42 = arith.constant 0 : index
    %72 = vector.load %arg7[%c1_40, %c0_41, %c0_42] : memref<2x32x128xf32, #tpu.memory_space<vmem>>, vector<1x32x128xf32>
    %73 = vector.shape_cast %72 : vector<1x32x128xf32> to vector<32x128xf32>
    %74 = vector.shape_cast %71 : vector<32x128xf32> to vector<1x32x128xf32>
    tpu.vector_store %arg7[%c1_40, %c0_41, %c0_42], %74 {strides = array<i32>} : memref<2x32x128xf32, #tpu.memory_space<vmem>>, vector<1x32x128xf32>,
    return
  }
  func.func @transform_0(%arg0: i32) -> (i32, i32, i32) {
    %c0_i32 = arith.constant 0 : i32
    %c0_i32_0 = arith.constant 0 : i32
    %c0_i32_1 = arith.constant 0 : i32
    return %arg0, %c0_i32, %c0_i32_0 : i32, i32, i32
  }
  func.func @transform_1(%arg0: i32) -> (i32, i32, i32) {
    %c0_i32 = arith.constant 0 : i32
    %c0_i32_0 = arith.constant 0 : i32
    %c0_i32_1 = arith.constant 0 : i32
    return %arg0, %c0_i32, %c0_i32_0 : i32, i32, i32
  }
  func.func @transform_2(%arg0: i32) -> (i32, i32, i32) {
    %c0_i32 = arith.constant 0 : i32
    %c0_i32_0 = arith.constant 0 : i32
    %c0_i32_1 = arith.constant 0 : i32
    return %arg0, %c0_i32, %c0_i32_0 : i32, i32, i32
  }
  func.func @transform_3(%arg0: i32) -> (i32, i32) {
    %c0_i32 = arith.constant 0 : i32
    %c0_i32_0 = arith.constant 0 : i32
    %c0_i32_1 = arith.constant 0 : i32
    return %c0_i32, %c0_i32_0 : i32, i32
  }
  func.func @transform_4(%arg0: i32) -> (i32, i32) {
    %c0_i32 = arith.constant 0 : i32
    %c0_i32_0 = arith.constant 0 : i32
    %c0_i32_1 = arith.constant 0 : i32
    return %c0_i32, %c0_i32_0 : i32, i32
  }
  func.func @transform_5(%arg0: i32) -> (i32, i32) {
    %c0_i32 = arith.constant 0 : i32
    %c0_i32_0 = arith.constant 0 : i32
    %c0_i32_1 = arith.constant 0 : i32
    return %c0_i32, %c0_i32_0 : i32, i32
  }
  func.func @transform_6(%arg0: i32) -> (i32, i32, i32) {
    %c0_i32 = arith.constant 0 : i32
    %c0_i32_0 = arith.constant 0 : i32
    %c0_i32_1 = arith.constant 0 : i32
    return %arg0, %c0_i32, %c0_i32_0 : i32, i32, i32
  }
}

</mosaic_0001>

<bundles_post_ra>
// kernel: tpu_custom_call.1
= control target key start
LH: loop header
LB: loop body
LE: loop exit
PB: predicated region body
PF: predicated region fallthrough
CT: control target
= control target key end

     0   :  { %11 = vsyncpa [#allocation3], 0  ;;  %s900_s0 = inlined_call_operand.vmem [shape: f32[2,32,128], index: 0, kind: input, shape index: {}]   ;;  %s901_s1 = inlined_call_operand.hbm [shape: f32[2,128,128], index: 1, kind: input, shape index: {}]   ;;  %s902_s2 = inlined_call_operand.hbm [shape: f32[2,128,128], index: 2, kind: input, shape index: {}]   ;;  %s903_s3 = inlined_call_operand.vmem [shape: f32[48,32], index: 3, kind: input, shape index: {}]   ;;  %s904_s4 = inlined_call_operand.vmem [shape: f32[32,48], index: 4, kind: input, shape index: {}]   ;;  %s905_s5 = inlined_call_operand.vmem [shape: f32[80,1], index: 5, kind: input, shape index: {}]   ;;  %s906_s6 = inlined_call_operand.hbm [shape: f32[2,32,128], index: 6, kind: output, shape index: {}]  }
   0x1   :  { %12 = vsyncpa [#allocation6], 0 }
   0x2   :  { %13 = vsyncpa [#allocation4], 0  ;;  %s20_s23 = sshll.u32 %s901_s1, 4  ;;  %s625_s24 = smov [#allocation2]   ;;  %s21_s23 = int_to_ptr.hbm [resolvable:$true] %s20_s23 }
   0x3   :  { %s22_s25 = sshll.u32 %s625_s24, 4  ;;  %s33_s28 = sshll.u32 %s902_s2, 4  ;;  %s23_s25 = int_to_ptr.vmem [resolvable:$true] %s22_s25  ;;  %s34_s28 = int_to_ptr.hbm [resolvable:$true] %s33_s28 }
   0x4   :  { %s626_s29 = smov 128   ;;  %s627_s30 = smov 8  }
   0x5   :  { %28 = dma.hbm_to_vmem [thread:$0]  %s21_s23, 4096, %s23_s25, [#allocation3], %s626_s29, %s626_s29, %s627_s30  }
   0x6   :  { %s628_s7 = smov [#allocation5]  }
   0x7   :  { %s35_s8 = sshll.u32 %s628_s7, 4  ;;  %s36_s8 = int_to_ptr.vmem [resolvable:$true] %s35_s8 }
   0x8   :  { %41 = dma.hbm_to_vmem [thread:$0]  %s34_s28, 4096, %s36_s8, [#allocation6], %s626_s29, %s626_s29, %s627_s30  }
   0x9   :  { %619 = dma.done.wait [#allocation3], 4096  }
   0xa   :  { %620 = vsyncadd [#allocation3], 4294963200 }
   0xb   :  { %621 = dma.done.wait [#allocation6], 4096  }
   0xc   :  { %622 = vsyncadd [#allocation6], 4294963200  ;;  %v681_v0 = vld [vmem:[%s900_s0 + $0x18] sm:$0xff]  ;;  %v686_v1 = vld [vmem:[%s900_s0 + $0x10] sm:$0xff]  ;;  %v629_v2 = vmov 0   ;;  %vm112_vm0 = vcmask 261120  }
   0xd   :  { %143 = vmatpush.msra.mxu0 %v681_v0  ;;  %546 = vset.pattern.permute.xlu2 %v629_v2  ;;  %v692_v3 = vld [vmem:[%s900_s0 + $0x8] sm:$0xff]  ;;  %v701_v5 = vld [vmem:[%s900_s0] sm:$0xff]  ;;  %v95_v9 = vld [vmem:[#allocation2 + $0x78] sm:$0xff]  ;;  %vm270_vm1 = vcmask 392192   ;;  %s500_s14 = sshll.u32 %s906_s6, 4  ;;  %s501_s14 = int_to_ptr.hbm [resolvable:$true] %s500_s14 }
   0xe   :  { %v67_v4 = vld [vmem:[%s905_s5 + $0x8] sm:$0xff]  ;;  %545 = vset.pattern.permute.xlu1 %v629_v2  ;;  %544 = vset.pattern.permute.xlu0 %v629_v2  ;;  %v707_v6 = vld [vmem:[%s903_s3] sm:$0xff]  ;;  %v94_v10 = vld [vmem:[#allocation2 + $0x70] sm:$0xff] }
   0xf   :  { %144 = vmatpush.msra.mxu0 %v686_v1  ;;  %173 = vperm.xlu2 %546, %v67_v4   ;;  %v66_v7 = vld [vmem:[%s905_s5] sm:$0xff]  ;;  %v718_v8 = vld [vmem:[%s903_s3 + $0x8] sm:$0xff]  ;;  %v725_v13 = vld [vmem:[%s903_s3 + $0x10] sm:$0xff] }
  0x10   :  { %190 = vmatpush.msra.mxu1 %v95_v9  ;;  %v93_v11 = vld [vmem:[#allocation2 + $0x68] sm:$0xff]  ;;  %v92_v12 = vld [vmem:[#allocation2 + $0x60] sm:$0xff]  ;;  %v732_v14 = vld [vmem:[%s903_s3 + $0x18] sm:$0xff] }
  0x11   :  { %145 = vmatpush.msra.mxu0 %v692_v3  ;;  %v739_v15 = vld [vmem:[%s903_s3 + $0x20] sm:$0xff]  ;;  %v746_v16 = vld [vmem:[%s903_s3 + $0x28] sm:$0xff]  ;;  %v91_v17 = vld [vmem:[#allocation2 + $0x58] sm:$0xff] }
  0x12   :  { %191 = vmatpush.msra.mxu1 %v94_v10  ;;  %v90_v18 = vld [vmem:[#allocation2 + $0x50] sm:$0xff]  ;;  %v89_v19 = vld [vmem:[#allocation2 + $0x48] sm:$0xff]  ;;  %v88_v20 = vld [vmem:[#allocation2 + $0x40] sm:$0xff] }
  0x13   :  { %146 = vmatpush.msra.mxu0 %v701_v5  ;;  %v87_v21 = vld [vmem:[#allocation2 + $0x38] sm:$0xff]  ;;  %v86_v23 = vld [vmem:[#allocation2 + $0x30] sm:$0xff]  ;;  %v85_v25 = vld [vmem:[#allocation2 + $0x28] sm:$0xff] }
  0x14   :  { %514 = vmatmul.msk.f32.vlgmr.msra.gmra.mxu0 %vm112_vm0, %v707_v6  ;;  %192 = vmatpush.msra.mxu1 %v93_v11  ;;  %v111_v22 = vld [vmem:[#allocation5 + $0x78] sm:$0xff]  ;;  %v110_v24 = vld [vmem:[#allocation5 + $0x70] sm:$0xff]  ;;  %v109_v26 = vld [vmem:[#allocation5 + $0x68] sm:$0xff] }
  0x15   :  { %225 = vmatpush.msra.mxu2 %v111_v22  ;;  %v84_v27 = vld [vmem:[#allocation2 + $0x20] sm:$0xff]  ;;  %v83_v29 = vld [vmem:[#allocation2 + $0x18] sm:$0xff]  ;;  %v82_v31 = vld [vmem:[#allocation2 + $0x10] sm:$0xff] }
  0x16   :  { %193 = vmatpush.msra.mxu1 %v92_v12  ;;  %v108_v28 = vld [vmem:[#allocation5 + $0x60] sm:$0xff]  ;;  %v107_v30 = vld [vmem:[#allocation5 + $0x58] sm:$0xff]  ;;  %v106_v32 = vld [vmem:[#allocation5 + $0x50] sm:$0xff] }
  0x17   :  { %168 = vperm.xlu2 %546, %v66_v7   ;;  %226 = vmatpush.msra.mxu2 %v110_v24  ;;  %v81_v33 = vld [vmem:[#allocation2 + $0x8] sm:$0xff]  ;;  %v80_v35 = vld [vmem:[#allocation2] sm:$0xff]  ;;  %v103_v37 = vld [vmem:[#allocation5 + $0x38] sm:$0xff] }
  0x18   :  { %194 = vmatpush.msra.mxu1 %v91_v17  ;;  %v105_v34 = vld [vmem:[#allocation5 + $0x48] sm:$0xff]  ;;  %v104_v36 = vld [vmem:[#allocation5 + $0x40] sm:$0xff]  ;;  %v102_v38 = vld [vmem:[#allocation5 + $0x30] sm:$0xff] }
  0x19   :  { %227 = vmatpush.msra.mxu2 %v109_v26  ;;  %v69_v39 = vld [vmem:[%s905_s5 + $0x18] sm:$0xff]  ;;  %v101_v40 = vld [vmem:[#allocation5 + $0x28] sm:$0xff]  ;;  %v100_v41 = vld [vmem:[#allocation5 + $0x20] sm:$0xff] }
  0x1a   :  { %195 = vmatpush.msra.mxu1 %v90_v18  ;;  %187 = vperm.xlu1 %545, %v69_v39   ;;  %v99_v42 = vld [vmem:[#allocation5 + $0x18] sm:$0xff]  ;;  %v98_v43 = vld [vmem:[#allocation5 + $0x10] sm:$0xff]  ;;  %v71_v44 = vld [vmem:[%s905_s5 + $0x28] sm:$0xff] }
  0x1b   :  { %228 = vmatpush.msra.mxu2 %v108_v28  ;;  %222 = vperm.xlu0 %544, %v71_v44   ;;  %v68_v45 = vld [vmem:[%s905_s5 + $0x10] sm:$0xff]  ;;  %v97_v46 = vld [vmem:[#allocation5 + $0x8] sm:$0xff]  ;;  %v96_v47 = vld [vmem:[#allocation5] sm:$0xff] }
  0x1c   :  { %515 = vmatmul.msk.f32.gmra.mxu0 %vm112_vm0, %v718_v8  ;;  %196 = vmatpush.msra.mxu1 %v89_v19  ;;  %v70_v49 = vld [vmem:[%s905_s5 + $0x20] sm:$0xff]  ;;  %v72_v51 = vld [vmem:[%s905_s5 + $0x30] sm:$0xff]  ;;  %v73_v52 = vld [vmem:[%s905_s5 + $0x38] sm:$0xff] }
  0x1d   :  { %229 = vmatpush.msra.mxu2 %v107_v30  ;;  %v74_v53 = vld [vmem:[%s905_s5 + $0x40] sm:$0xff]  ;;  %v75_v54 = vld [vmem:[%s905_s5 + $0x48] sm:$0xff]  ;;  %v800_v28 = vld [vmem:[%s900_s0 + $0x38] sm:$0xff] }
  0x1e   :  { %197 = vmatpush.msra.mxu1 %v88_v20  ;;  %v813_v30 = vld [vmem:[%s900_s0 + $0x28] sm:$0xff]  ;;  %v361_v44 = vld [vmem:[#allocation5 + $0xf0] sm:$0xff] }
  0x1f   :  { %230 = vmatpush.msra.mxu2 %v106_v32  ;;  %262 = vperm.xlu2 %546, %v74_v53   ;;  %v824_v32 = vld [vmem:[%s904_s4 + $0x8] sm:$0xff]  ;;  %v358_v53 = vld [vmem:[#allocation5 + $0xd8] sm:$0xff] }
  0x20   :  { %198 = vmatpush.msra.mxu1 %v87_v21 }
  0x21   :  { %231 = vmatpush.msra.mxu2 %v105_v34  ;;  %v840_v34 = vld [vmem:[%s904_s4 + $0x18] sm:$0xff] }
  0x22   :  { %199 = vmatpush.msra.mxu1 %v86_v23  ;;  %182 = vperm.xlu1 %545, %v68_v45   ;;  %v335_v45 = vld [vmem:[#allocation2 + $0xa8] sm:$0xff] }
  0x23   :  { %232 = vmatpush.msra.mxu2 %v104_v36  ;;  %217 = vperm.xlu0 %544, %v70_v49   ;;  %v344_v36 = vld [vmem:[#allocation2 + $0xf0] sm:$0xff]  ;;  %v359_v49 = vld [vmem:[#allocation5 + $0xe0] sm:$0xff] }
  0x24   :  { %516 = vmatmul.msk.f32.gmra.mxu0 %vm112_vm0, %v725_v13  ;;  %200 = vmatpush.msra.mxu1 %v85_v25 }
  0x25   :  { %233 = vmatpush.msra.mxu2 %v103_v37  ;;  %v342_v37 = vld [vmem:[#allocation2 + $0xe0] sm:$0xff] }
  0x26   :  { %201 = vmatpush.msra.mxu1 %v84_v27  ;;  %v795_v27 = vld [vmem:[%s904_s4] sm:$0xff] }
  0x27   :  { %234 = vmatpush.msra.mxu2 %v102_v38  ;;  %v339_v38 = vld [vmem:[#allocation2 + $0xc8] sm:$0xff] }
  0x28   :  { %202 = vmatpush.msra.mxu1 %v83_v29  ;;  %v807_v29 = vld [vmem:[%s900_s0 + $0x30] sm:$0xff] }
  0x29   :  { %235 = vmatpush.msra.mxu2 %v101_v40  ;;  %v337_v40 = vld [vmem:[#allocation2 + $0xb8] sm:$0xff] }
  0x2a   :  { %203 = vmatpush.msra.mxu1 %v82_v31  ;;  %257 = vperm.xlu1 %545, %v73_v52   ;;  %v819_v31 = vld [vmem:[%s900_s0 + $0x20] sm:$0xff] }
  0x2b   :  { %236 = vmatpush.msra.mxu2 %v100_v41  ;;  %252 = vperm.xlu0 %544, %v72_v51   ;;  %v362_v41 = vld [vmem:[#allocation5 + $0xf8] sm:$0xff] }
  0x2c   :  { %517 = vmatmul.msk.f32.gmra.mxu0 %vm112_vm0, %v732_v14  ;;  %204 = vmatpush.msra.mxu1 %v81_v33  ;;  %v833_v33 = vld [vmem:[%s904_s4 + $0x10] sm:$0xff]  ;;  %s630_s4 = smov [#allocation7]  }
  0x2d   :  { %237 = vmatpush.msra.mxu2 %v99_v42  ;;  %s498_s11 = sshll.u32 %s630_s4, 4  ;;  %s499_s11 = int_to_ptr.vmem [resolvable:$true] %s498_s11 }
  0x2e   :  { %205 = vmatpush.msra.mxu1 %v80_v35  ;;  %v345_v35 = vld [vmem:[#allocation2 + $0xf8] sm:$0xff] }
  0x2f   :  { %238 = vmatpush.msra.mxu2 %v98_v43  ;;  %402 = vmatpush.msrb.mxu0 %v345_v35  ;;  %v336_v43 = vld [vmem:[#allocation2 + $0xb0] sm:$0xff] }
  0x30   :  { %427 = vmatpush.msrb.mxu1 %v362_v41 }
  0x31   :  { %239 = vmatpush.msra.mxu2 %v97_v46  ;;  %403 = vmatpush.msrb.mxu0 %v344_v36  ;;  %v360_v46 = vld [vmem:[#allocation5 + $0xe8] sm:$0xff] }
  0x32   :  { %428 = vmatpush.msrb.mxu1 %v361_v44  ;;  %v348_v36 = vld [vmem:[#allocation5 + $0x88] sm:$0xff] }
  0x33   :  { %240 = vmatpush.msra.mxu2 %v96_v47  ;;  %267 = vperm.xlu0 %544, %v75_v54  }
  0x34   :  { %518 = vmatmul.msk.f32.gmra.mxu0 %vm112_vm0, %v739_v15  ;;  %429 = vmatpush.msrb.mxu1 %v360_v46 }
  0x36   :  { %430 = vmatpush.msrb.mxu1 %v359_v49 }
  0x38   :  { %431 = vmatpush.msrb.mxu1 %v358_v53 }
  0x3c   :  { %519 = vmatmul.msk.f32.gmra.mxu0 %vm112_vm0, %v746_v16 }
  0x69   :  { %v778_v63 = vpop.permute.xlu2 %173 }
  0x71   :  { %v788_v20 = vpop.permute.xlu2 %168 }
  0x8c   :  { %v776_v61 = vpop.permute.xlu1 %187 }
  0x8d   :  { %v774_v59 = vpop.permute.xlu0 %222 }
  0x91   :  { %v148_v48 = vpop.f32.mrf.mxu0 }
  0x92   :  { %v176_v23 = vadd.f32 %v788_v20, %v148_v48  ;;  %v334_v48 = vld [vmem:[#allocation2 + $0xa0] sm:$0xff] }
  0x94   :  { %v784_v11 = vpop.permute.xlu1 %182  ;;  %v178_v26 = vmax.f32 %v176_v23, 0.0 }
  0x95   :  { %v780_v2 = vpop.permute.xlu0 %217 }
  0x99   :  { %v151_v50 = vpop.f32.mrf.mxu0 }
  0x9a   :  { %v177_v21 = vadd.f32 %v778_v63, %v151_v50 }
  0x9c   :  { %v179_v25 = vmax.f32 %v177_v21, 0.0  ;;  %v860_v50 = vpop.permute.xlu1 %257  ;;  %v351_v21 = vld [vmem:[#allocation5 + $0xa0] sm:$0xff] }
  0x9d   :  { %v856_v39 = vpop.permute.xlu0 %252 }
  0xa1   :  { %v154_v55 = vpop.f32.mrf.mxu0 }
  0xa2   :  { %206 = vmatmul.f32.vlgmr.msra.gmra.mxu1 %v154_v55  ;;  %v332_v55 = vld [vmem:[#allocation2 + $0x90] sm:$0xff] }
  0xa9   :  { %v157_v56 = vpop.f32.mrf.mxu0 }
  0xaa   :  { %209 = vmatmul.f32.gmra.mxu1 %v157_v56  ;;  %v357_v56 = vld [vmem:[#allocation5 + $0xd0] sm:$0xff] }
  0xab   :  { %432 = vmatpush.msrb.mxu1 %v357_v56 }
  0xb1   :  { %v160_v57 = vpop.f32.mrf.mxu0 }
  0xb2   :  { %241 = vmatmul.f32.vlgmr.msra.gmra.mxu2 %v160_v57  ;;  %v331_v57 = vld [vmem:[#allocation2 + $0x88] sm:$0xff] }
  0xb9   :  { %v163_v58 = vpop.f32.mrf.mxu0 }
  0xba   :  { %244 = vmatmul.f32.gmra.mxu2 %v163_v58  ;;  %v356_v58 = vld [vmem:[#allocation5 + $0xc8] sm:$0xff] }
  0xbb   :  { %433 = vmatpush.msrb.mxu1 %v356_v58 }
 0x11f   :  { %v207_v60 = vpop.f32.mrf.mxu1 }
 0x120   :  { %v208_v18 = vadd.f32 %v207_v60, %v784_v11 }
 0x122   :  { %v213_v24 = vmax.f32 %v208_v18, 0.0  ;;  %v352_v18 = vld [vmem:[#allocation5 + $0xa8] sm:$0xff] }
 0x127   :  { %v210_v4 = vpop.f32.mrf.mxu1 }
 0x128   :  { %v211_v12 = vadd.f32 %v210_v4, %v776_v61  ;;  %v355_v4 = vld [vmem:[#allocation5 + $0xc0] sm:$0xff] }
 0x129   :  { %434 = vmatpush.msrb.mxu1 %v355_v4 }
 0x12a   :  { %v214_v22 = vmax.f32 %v211_v12, 0.0  ;;  %v353_v12 = vld [vmem:[#allocation5 + $0xb0] sm:$0xff] }
 0x135   :  { %v242_v62 = vpop.f32.mrf.mxu2 }
 0x136   :  { %v243_v9 = vadd.f32 %v242_v62, %v780_v2  ;;  %v330_v62 = vld [vmem:[#allocation2 + $0x80] sm:$0xff] }
 0x138   :  { %v248_v19 = vmax.f32 %v243_v9, 0.0 }
 0x13d   :  { %v245_v7 = vpop.f32.mrf.mxu2 }
 0x13e   :  { %v246_v10 = vadd.f32 %v245_v7, %v774_v59  ;;  %v864_v7 = vpop.permute.xlu2 %262 }
 0x140   :  { %v249_v17 = vmax.f32 %v246_v10, 0.0 }
 0x142   :  { %293 = vmatpush.msra.mxu3 %v249_v17 }
 0x144   :  { %294 = vmatpush.msra.mxu3 %v248_v19 }
 0x146   :  { %295 = vmatpush.msra.mxu3 %v214_v22  ;;  %v868_v22 = vpop.permute.xlu0 %267 }
 0x148   :  { %296 = vmatpush.msra.mxu3 %v213_v24 }
 0x14a   :  { %297 = vmatpush.msra.mxu3 %v179_v25  ;;  %v350_v25 = vld [vmem:[#allocation5 + $0x98] sm:$0xff] }
 0x14c   :  { %298 = vmatpush.msra.mxu3 %v178_v26  ;;  %v349_v26 = vld [vmem:[#allocation5 + $0x90] sm:$0xff] }
 0x14d   :  { %520 = vmatmul.msk.f32.vlgmr.msra.gmra.mxu3 %vm270_vm1, %v795_v27 }
 0x14e   :  { %375 = vmatpush.msrb.mxu3 %v800_v28 }
 0x150   :  { %376 = vmatpush.msrb.mxu3 %v807_v29 }
 0x152   :  { %377 = vmatpush.msrb.mxu3 %v813_v30 }
 0x154   :  { %378 = vmatpush.msrb.mxu3 %v819_v31 }
 0x155   :  { %521 = vmatmul.msk.f32.gmra.mxu3 %vm270_vm1, %v824_v32 }
 0x15d   :  { %522 = vmatmul.msk.f32.gmra.mxu3 %vm270_vm1, %v833_v33 }
 0x165   :  { %523 = vmatmul.msk.f32.gmra.mxu3 %vm270_vm1, %v840_v34 }
 0x16d   :  { %528 = vmatmul.msk.f32.vlgmr.msrb.gmra.mxu3 %vm112_vm0, %v707_v6  ;;  %v343_v6 = vld [vmem:[#allocation2 + $0xe8] sm:$0xff] }
 0x16e   :  { %404 = vmatpush.msrb.mxu0 %v343_v6  ;;  %v347_v6 = vld [vmem:[#allocation5 + $0x80] sm:$0xff] }
 0x170   :  { %405 = vmatpush.msrb.mxu0 %v342_v37 }
 0x175   :  { %529 = vmatmul.msk.f32.gmra.mxu3 %vm112_vm0, %v718_v8  ;;  %v341_v8 = vld [vmem:[#allocation2 + $0xd8] sm:$0xff] }
 0x176   :  { %406 = vmatpush.msrb.mxu0 %v341_v8 }
 0x17d   :  { %530 = vmatmul.msk.f32.gmra.mxu3 %vm112_vm0, %v725_v13  ;;  %v340_v13 = vld [vmem:[#allocation2 + $0xd0] sm:$0xff] }
 0x17e   :  { %407 = vmatpush.msrb.mxu0 %v340_v13 }
 0x180   :  { %408 = vmatpush.msrb.mxu0 %v339_v38 }
 0x185   :  { %531 = vmatmul.msk.f32.gmra.mxu3 %vm112_vm0, %v732_v14  ;;  %v338_v14 = vld [vmem:[#allocation2 + $0xc0] sm:$0xff] }
 0x186   :  { %409 = vmatpush.msrb.mxu0 %v338_v14 }
 0x188   :  { %410 = vmatpush.msrb.mxu0 %v337_v40 }
 0x18a   :  { %411 = vmatpush.msrb.mxu0 %v336_v43 }
 0x18c   :  { %412 = vmatpush.msrb.mxu0 %v335_v45 }
 0x18d   :  { %532 = vmatmul.msk.f32.gmra.mxu3 %vm112_vm0, %v739_v15 }
 0x18e   :  { %413 = vmatpush.msrb.mxu0 %v334_v48 }
 0x195   :  { %533 = vmatmul.msk.f32.gmra.mxu3 %vm112_vm0, %v746_v16 }
 0x1d0   :  { %v300_v15 = vpop.f32.mrf.mxu3 }
 0x1d1   :  { %v301_v16 = vadd.f32 %v300_v15, %v856_v39 }
 0x1d3   :  { %v312_v42 = vadd.f32 %v301_v16, %v701_v5  ;;  %v333_v5 = vld [vmem:[#allocation2 + $0x98] sm:$0xff] }
 0x1d4   :  { %414 = vmatpush.msrb.mxu0 %v333_v5 }
 0x1d5   :  { %v316_v47 = vmax.f32 %v312_v42, 0.0 }
 0x1d6   :  { %415 = vmatpush.msrb.mxu0 %v332_v55 }
 0x1d7   :  { %320 = vst [vmem:[#allocation7] sm:$0xff] %v316_v47 }
 0x1d8   :  { %v303_v51 = vpop.f32.mrf.mxu3  ;;  %416 = vmatpush.msrb.mxu0 %v331_v57 }
 0x1d9   :  { %v304_v52 = vadd.f32 %v303_v51, %v860_v50 }
 0x1da   :  { %417 = vmatpush.msrb.mxu0 %v330_v62 }
 0x1db   :  { %v313_v54 = vadd.f32 %v304_v52, %v692_v3  ;;  %v354_v3 = vld [vmem:[#allocation5 + $0xb8] sm:$0xff] }
 0x1dc   :  { %435 = vmatpush.msrb.mxu1 %v354_v3 }
 0x1dd   :  { %v317_v60 = vmax.f32 %v313_v54, 0.0 }
 0x1de   :  { %436 = vmatpush.msrb.mxu1 %v353_v12 }
 0x1df   :  { %321 = vst [vmem:[#allocation7 + $0x8] sm:$0xff] %v317_v60 }
 0x1e0   :  { %v306_v9 = vpop.f32.mrf.mxu3  ;;  %437 = vmatpush.msrb.mxu1 %v352_v18 }
 0x1e1   :  { %v307_v10 = vadd.f32 %v306_v9, %v864_v7 }
 0x1e2   :  { %438 = vmatpush.msrb.mxu1 %v351_v21 }
 0x1e3   :  { %v314_v17 = vadd.f32 %v307_v10, %v686_v1 }
 0x1e4   :  { %439 = vmatpush.msrb.mxu1 %v350_v25 }
 0x1e5   :  { %v318_v19 = vmax.f32 %v314_v17, 0.0 }
 0x1e6   :  { %440 = vmatpush.msrb.mxu1 %v349_v26 }
 0x1e7   :  { %322 = vst [vmem:[#allocation7 + $0x10] sm:$0xff] %v318_v19 }
 0x1e8   :  { %v309_v23 = vpop.f32.mrf.mxu3  ;;  %441 = vmatpush.msrb.mxu1 %v348_v36 }
 0x1e9   :  { %v310_v24 = vadd.f32 %v309_v23, %v868_v22 }
 0x1ea   :  { %442 = vmatpush.msrb.mxu1 %v347_v6 }
 0x1eb   :  { %v315_v35 = vadd.f32 %v310_v24, %v681_v0 }
 0x1ed   :  { %v319_v1 = vmax.f32 %v315_v35, 0.0 }
 0x1ef   :  { %323 = vst [vmem:[#allocation7 + $0x18] sm:$0xff] %v319_v1 }
 0x1f0   :  { %v380_v37 = vpop.f32.mrf.mxu3 }
 0x1f1   :  { %v398_v51 = vadd.f32 %v380_v37, %v788_v20 }
 0x1f8   :  { %v383_v8 = vpop.f32.mrf.mxu3 }
 0x1f9   :  { %v399_v48 = vadd.f32 %v383_v8, %v778_v63 }
 0x1fb   :  { %v401_v5 = vmax.f32 %v399_v48, 0.0 }
 0x200   :  { %v386_v13 = vpop.f32.mrf.mxu3 }
 0x201   :  { %418 = vmatmul.f32.vlgmr.msrb.gmra.mxu0 %v386_v13 }
 0x208   :  { %v389_v38 = vpop.f32.mrf.mxu3 }
 0x209   :  { %421 = vmatmul.f32.gmra.mxu0 %v389_v38 }
 0x210   :  { %v392_v14 = vpop.f32.mrf.mxu3 }
 0x211   :  { %443 = vmatmul.f32.vlgmr.msrb.gmra.mxu1 %v392_v14 }
 0x218   :  { %v395_v15 = vpop.f32.mrf.mxu3 }
 0x219   :  { %446 = vmatmul.f32.gmra.mxu1 %v395_v15 }
 0x27e   :  { %v419_v16 = vpop.f32.mrf.mxu0 }
 0x27f   :  { %v420_v46 = vadd.f32 %v419_v16, %v784_v11 }
 0x281   :  { %v425_v52 = vmax.f32 %v420_v46, 0.0 }
 0x286   :  { %v422_v0 = vpop.f32.mrf.mxu0 }
 0x287   :  { %v423_v44 = vadd.f32 %v422_v0, %v776_v61 }
 0x289   :  { %v426_v49 = vmax.f32 %v423_v44, 0.0 }
 0x28e   :  { %v444_v40 = vpop.f32.mrf.mxu1 }
 0x28f   :  { %v445_v42 = vadd.f32 %v444_v40, %v780_v2  ;;  %v400_v2 = vmax.f32 %v398_v51, 0.0 }
 0x291   :  { %v450_v47 = vmax.f32 %v445_v42, 0.0 }
 0x296   :  { %v447_v41 = vpop.f32.mrf.mxu1 }
 0x297   :  { %v448_v43 = vadd.f32 %v447_v41, %v774_v59 }
 0x299   :  { %v451_v45 = vmax.f32 %v448_v43, 0.0 }
 0x29b   :  { %462 = vmatpush.msrb.mxu2 %v451_v45 }
 0x29d   :  { %463 = vmatpush.msrb.mxu2 %v450_v47 }
 0x29f   :  { %464 = vmatpush.msrb.mxu2 %v426_v49 }
 0x2a1   :  { %465 = vmatpush.msrb.mxu2 %v425_v52 }
 0x2a3   :  { %466 = vmatpush.msrb.mxu2 %v401_v5 }
 0x2a5   :  { %467 = vmatpush.msrb.mxu2 %v400_v2 }
 0x2a6   :  { %534 = vmatmul.msk.f32.vlgmr.msrb.gmra.mxu2 %vm270_vm1, %v795_v27 }
 0x2ae   :  { %535 = vmatmul.msk.f32.gmra.mxu2 %vm270_vm1, %v824_v32 }
 0x2b6   :  { %536 = vmatmul.msk.f32.gmra.mxu2 %vm270_vm1, %v833_v33 }
 0x2be   :  { %537 = vmatmul.msk.f32.gmra.mxu2 %vm270_vm1, %v840_v34 }
 0x329   :  { %v469_v59 = vpop.f32.mrf.mxu2 }
 0x32a   :  { %v470_v61 = vadd.f32 %v469_v59, %v856_v39 }
 0x32c   :  { %v481_v63 = vadd.f32 %v819_v31, %v470_v61 }
 0x32e   :  { %v485_v11 = vmax.f32 %v481_v63, 0.0 }
 0x330   :  { %490 = vst [vmem:[#allocation7 + $0x20] sm:$0xff] %v485_v11 }
 0x331   :  { %v472_v20 = vpop.f32.mrf.mxu2 }
 0x332   :  { %v473_v53 = vadd.f32 %v472_v20, %v860_v50 }
 0x334   :  { %v482_v27 = vadd.f32 %v813_v30, %v473_v53 }
 0x336   :  { %v486_v54 = vmax.f32 %v482_v27, 0.0 }
 0x338   :  { %491 = vst [vmem:[#allocation7 + $0x28] sm:$0xff] %v486_v54 }
 0x339   :  { %v475_v32 = vpop.f32.mrf.mxu2 }
 0x33a   :  { %v476_v33 = vadd.f32 %v475_v32, %v864_v7 }
 0x33c   :  { %v483_v55 = vadd.f32 %v807_v29, %v476_v33 }
 0x33e   :  { %v487_v34 = vmax.f32 %v483_v55, 0.0 }
 0x340   :  { %492 = vst [vmem:[#allocation7 + $0x30] sm:$0xff] %v487_v34 }
 0x341   :  { %v478_v56 = vpop.f32.mrf.mxu2 }
 0x342   :  { %v479_v39 = vadd.f32 %v478_v56, %v868_v22 }
 0x344   :  { %v484_v30 = vadd.f32 %v800_v28, %v479_v39 }
 0x346   :  { %v488_v31 = vmax.f32 %v484_v30, 0.0 }
 0x348   :  { %493 = vst [vmem:[#allocation7 + $0x38] sm:$0xff] %v488_v31 }
 0x349   :  { %506 = dma.vmem_to_hbm [thread:$0]  %s499_s11, 1024, %s501_s14, [#allocation4], %s626_s29, %s626_s29, %s627_s30  }
 0x34a   :  { %623 = dma.done.wait [#allocation4], 1024  }
 0x34b   :  { %624 = vsyncadd [#allocation4], 4294966272 }
 0x34c   :  { %511 = vsyncpa [#allocation3], 1 }
 0x34d   :  { %512 = vsyncpa [#allocation6], 1 }
 0x34e   :  { %513 = vsyncpa [#allocation4], 1 }

</bundles_post_ra>
